<compile_context>
chip_gen: v7x
topology: tpu7x:2x2x1
jax: 0.10.0
libtpu: 0.0.40
codegen_flags: <defaults>
</compile_context>

<pallas_src>
import functools

import jax
import jax.numpy as jnp
from jax.experimental import pallas as pl
from jax.experimental.pallas import tpu as pltpu


def _round_up(n: int, m: int) -> int:
    return ((n + m - 1) // m) * m


def shot_predictor_kernel(x_ref, w1_ref, b1_ref, w2_ref, b2_ref, w3_ref, b3_ref, o_ref):
    """Fused 3-layer MLP on one (tile_b, in_size) batch tile.

    x arrives as f32 and is cast to bf16 in-kernel (cheap VPU op, hidden under
    DMA/MXU). Accumulation and all elementwise math are f32. Output columns are
    the real out_size (no lane padding), so no wasted EUP exps or HBM writes.
    """
    # TODO(synk): training-mode dropout (stochastic masking) intentionally not emulated.
    x = x_ref[...].astype(w1_ref.dtype)

    h1 = jnp.dot(x, w1_ref[...], preferred_element_type=jnp.float32)
    h1 = jnp.maximum(h1 + b1_ref[...], 0.0)

    h2 = jnp.dot(h1.astype(w2_ref.dtype), w2_ref[...], preferred_element_type=jnp.float32)
    h2 = jnp.maximum(h2 + b2_ref[...], 0.0)

    logits = jnp.dot(h2.astype(w3_ref.dtype), w3_ref[...], preferred_element_type=jnp.float32)
    o_ref[...] = jax.nn.sigmoid(logits + b3_ref[...]).astype(o_ref.dtype)


def prepare_params(params, compute_dtype=jnp.bfloat16):
    """One-time pad/cast of weights so the per-call wrapper does zero extra XLA work.

    Weight layout is (in, out). Only contraction/hidden dims are padded to 128;
    the output feature dim stays at out_size. Zero padding keeps the math exact.
    """
    w1, b1, w2, b2, w3, b3 = (params["w1"], params["b1"], params["w2"],
                              params["b2"], params["w3"], params["b3"])
    in_size, hid_size = w1.shape
    out_size = w3.shape[1]
    HID_P = _round_up(hid_size, 128)

    def pad2(a, rows, cols, dtype):
        a = a.astype(dtype)
        return jnp.pad(a, ((0, rows - a.shape[0]), (0, cols - a.shape[1])))

    return {
        "w1": pad2(w1, in_size, HID_P, compute_dtype),   # (in, HID_P)
        "b1": pad2(b1, 1, HID_P, jnp.float32),           # (1, HID_P), zero pad -> ReLU(0)=0
        "w2": pad2(w2, HID_P, HID_P, compute_dtype),     # (HID_P, HID_P)
        "b2": pad2(b2, 1, HID_P, jnp.float32),
        "w3": pad2(w3, HID_P, out_size, compute_dtype),  # (HID_P, out_size) -- no lane pad
        "b3": b3.astype(jnp.float32),                    # (1, out_size)
        "in_size": in_size,
        "hid_size": hid_size,
        "out_size": out_size,
        "hid_pad": HID_P,
    }


def _mlp_jnp(x, prep):
    """Plain-JAX path with identical math (bf16 matmuls, f32 accumulate)."""
    cd = prep["w1"].dtype
    h1 = jnp.maximum(jnp.dot(x.astype(cd), prep["w1"],
                             preferred_element_type=jnp.float32) + prep["b1"], 0.0)
    h2 = jnp.maximum(jnp.dot(h1.astype(cd), prep["w2"],
                             preferred_element_type=jnp.float32) + prep["b2"], 0.0)
    return jax.nn.sigmoid(jnp.dot(h2.astype(cd), prep["w3"],
                                  preferred_element_type=jnp.float32) + prep["b3"])


def shot_predictor_forward(x, prep, *, tile_b=None, min_pallas_batch=512):
    """x: (B, input_size) float32. prep: output of prepare_params()."""
    B, in_size = x.shape
    assert in_size == prep["in_size"]
    out_size = prep["out_size"]
    HID_P = prep["hid_pad"]

    # Small-B fast path: the pallas_call is pure launch/DMA overhead there.
    if B < min_pallas_batch:
        return _mlp_jnp(x, prep)

    # Batch tile: up to 2048 rows (amortizes ~0.35us per grid step); keep >=4
    # grid steps when the batch is big enough so both v7x TCs stay busy and
    # double-buffering can overlap DMA with compute.
    if tile_b is None:
        tile_b = min(2048, _round_up(B, 8))
        while tile_b >= 1024 and _round_up(B, tile_b) // tile_b < 4:
            tile_b //= 2
    tile_b = max(8, _round_up(tile_b, 8))
    B_P = _round_up(B, tile_b)
    grid = (B_P // tile_b,)

    x_p = x if B_P == B else jnp.pad(x, ((0, B_P - B), (0, 0)))
    w1, b1, w2, b2, w3, b3 = (prep["w1"], prep["b1"], prep["w2"],
                              prep["b2"], prep["w3"], prep["b3"])

    # Weights/biases: constant block index -> DMA'd once, VMEM-resident.
    def resident(a):
        return pl.BlockSpec(a.shape, lambda i: (0, 0))

    weight_bytes = sum(int(a.size) * a.dtype.itemsize for a in (w1, b1, w2, b2, w3, b3))
    flops = 2 * B_P * (in_size * HID_P + HID_P * HID_P + HID_P * out_size)
    bytes_accessed = B_P * in_size * 4 + weight_bytes + B_P * out_size * 4

    # VMEM footprint estimate (double-buffered x/out, resident weights, f32 temps).
    vmem_est = (2 * tile_b * in_size * 4 + 2 * tile_b * out_size * 4
                + weight_bytes + 2 * tile_b * HID_P * 4)
    vmem_limit = int(min(48 << 20, max(32 << 20, 2 * vmem_est)))

    out = pl.pallas_call(
        shot_predictor_kernel,
        out_shape=jax.ShapeDtypeStruct((B_P, out_size), jnp.float32),
        grid=grid,
        in_specs=[
            pl.BlockSpec((tile_b, in_size), lambda i: (i, 0)),  # full last dim -> legal
            resident(w1), resident(b1),
            resident(w2), resident(b2),
            resident(w3), resident(b3),
        ],
        out_specs=pl.BlockSpec((tile_b, out_size), lambda i: (i, 0)),
        compiler_params=pltpu.CompilerParams(
            dimension_semantics=("parallel",),
            vmem_limit_bytes=vmem_limit),
        cost_estimate=pl.CostEstimate(
            flops=flops,
            transcendentals=B_P * out_size,
            bytes_accessed=bytes_accessed),
    )(x_p, w1, b1, w2, b2, w3, b3)

    return out[:B] if B_P != B else out


def init_params(key, input_size, hidden_size, output_size):
    """Deterministic synthetic init. Weights already transposed to (in, out)."""
    ks = jax.random.split(key, 6)

    def lin(kw, kb, fan_in, fan_out):
        # PyTorch default: U(-1/sqrt(fan_in), 1/sqrt(fan_in))
        bound = 1.0 / jnp.sqrt(fan_in)
        w = jax.random.uniform(kw, (fan_in, fan_out), jnp.float32, -bound, bound)
        b = jax.random.uniform(kb, (1, fan_out), jnp.float32, -bound, bound)
        return w, b

    w1, b1 = lin(ks[0], ks[1], input_size, hidden_size)
    w2, b2 = lin(ks[2], ks[3], hidden_size, hidden_size)
    w3, b3 = lin(ks[4], ks[5], hidden_size, output_size)
    return {"w1": w1, "b1": b1, "w2": w2, "b2": b2, "w3": w3, "b3": b3}


if __name__ == "__main__":
    # Small shapes consistent with the module: batch=8, input=32, hidden=64, output=8.
    B, INPUT, HIDDEN, OUTPUT = 8, 32, 64, 8

    key = jax.random.PRNGKey(0)
    k_x, k_p = jax.random.split(key)
    x = jax.random.normal(k_x, (B, INPUT), dtype=jnp.float32)
    params = init_params(k_p, INPUT, HIDDEN, OUTPUT)
    prep = prepare_params(params)

    # Force the Pallas path even at this tiny batch (min_pallas_batch=0).
    out = shot_predictor_forward(x, prep, min_pallas_batch=0)
    out = jax.block_until_ready(out)
    assert out.shape == (B, OUTPUT)

    # Pure-JAX reference on the ORIGINAL (unpadded) params with identical math:
    # bf16 matmul operands, f32 accumulate.
    cd = jnp.bfloat16
    h1 = jnp.maximum(jnp.dot(x.astype(cd), params["w1"].astype(cd),
                             preferred_element_type=jnp.float32) + params["b1"], 0.0)
    h2 = jnp.maximum(jnp.dot(h1.astype(cd), params["w2"].astype(cd),
                             preferred_element_type=jnp.float32) + params["b2"], 0.0)
    ref = jax.nn.sigmoid(jnp.dot(h2.astype(cd), params["w3"].astype(cd),
                                 preferred_element_type=jnp.float32) + params["b3"])

    err = float(jnp.max(jnp.abs(out - ref)))
    assert err < 2e-3, f"max abs error {err}"
    assert bool(jnp.all((out > 0.0) & (out < 1.0)))

    # Also sanity-check the small-batch fast path against the same reference.
    out_fast = jax.block_until_ready(shot_predictor_forward(x, prep))
    err_fast = float(jnp.max(jnp.abs(out_fast - ref)))
    assert err_fast < 2e-3, f"fast-path max abs error {err_fast}"

    print("KERNEL_OK")
</pallas_src>

<mosaic_0001>
module attributes {stable_mosaic.version = 11 : i64} {
  func.func @shot_predictor_kernel(%arg0: i32, %arg1: memref<8x32xf32, #tpu.memory_space<vmem>>, %arg2: memref<32x128xbf16, #tpu.memory_space<vmem>>, %arg3: memref<1x128xf32, #tpu.memory_space<vmem>>, %arg4: memref<128x128xbf16, #tpu.memory_space<vmem>>, %arg5: memref<1x128xf32, #tpu.memory_space<vmem>>, %arg6: memref<128x8xbf16, #tpu.memory_space<vmem>>, %arg7: memref<1x8xf32, #tpu.memory_space<vmem>>, %arg8: memref<8x8xf32, #tpu.memory_space<vmem>>) attributes {dimension_semantics = [#tpu.dimension_semantics<parallel>], iteration_bounds = array<i64: 1>, scalar_prefetch = 0 : i64, scratch_operands = 0 : i64, tpu.core_type = #tpu.core_type<tc>, window_params = [{transform_indices = @transform_0, window_bounds = array<i64: 8, 32>}, {pipeline_mode = #tpu.pipeline_mode<synchronous>, transform_indices = @transform_1, window_bounds = array<i64: 32, 128>}, {pipeline_mode = #tpu.pipeline_mode<synchronous>, transform_indices = @transform_2, window_bounds = array<i64: 1, 128>}, {pipeline_mode = #tpu.pipeline_mode<synchronous>, transform_indices = @transform_3, window_bounds = array<i64: 128, 128>}, {pipeline_mode = #tpu.pipeline_mode<synchronous>, transform_indices = @transform_4, window_bounds = array<i64: 1, 128>}, {pipeline_mode = #tpu.pipeline_mode<synchronous>, transform_indices = @transform_5, window_bounds = array<i64: 128, 8>}, {pipeline_mode = #tpu.pipeline_mode<synchronous>, transform_indices = @transform_6, window_bounds = array<i64: 1, 8>}, {transform_indices = @transform_7, window_bounds = array<i64: 8, 8>}]} {
    %c0 = arith.constant 0 : index
    %c0_0 = arith.constant 0 : index
    %0 = vector.load %arg1[%c0, %c0_0] : memref<8x32xf32, #tpu.memory_space<vmem>>, vector<8x32xf32>
    %1 = arith.truncf %0 : vector<8x32xf32> to vector<8x32xbf16>
    %c0_1 = arith.constant 0 : index
    %c0_2 = arith.constant 0 : index
    %2 = vector.load %arg2[%c0_1, %c0_2] : memref<32x128xbf16, #tpu.memory_space<vmem>>, vector<32x128xbf16>
    %cst = arith.constant dense<0.000000e+00> : vector<8x128xf32>
    %3 = tpu.matmul %1, %2, %cst {dimension_numbers = #tpu.dot_dimension_numbers<[1], [0], [0], [1], [0, 0, 1, 1], [], []>} : vector<8x32xbf16>, vector<32x128xbf16>, vector<8x128xf32> -> vector<8x128xf32>
    %c0_3 = arith.constant 0 : index
    %c0_4 = arith.constant 0 : index
    %4 = vector.load %arg3[%c0_3, %c0_4] : memref<1x128xf32, #tpu.memory_space<vmem>>, vector<1x128xf32>
    %5 = vector.broadcast %4 : vector<1x128xf32> to vector<8x128xf32>
    %6 = arith.addf %3, %5 : vector<8x128xf32>
    %cst_5 = arith.constant 0.000000e+00 : f32
    %7 = vector.broadcast %cst_5 : f32 to vector<8x128xf32>
    %8 = arith.maximumf %6, %7 : vector<8x128xf32>
    %9 = arith.truncf %8 : vector<8x128xf32> to vector<8x128xbf16>
    %c0_6 = arith.constant 0 : index
    %c0_7 = arith.constant 0 : index
    %10 = vector.load %arg4[%c0_6, %c0_7] : memref<128x128xbf16, #tpu.memory_space<vmem>>, vector<128x128xbf16>
    %cst_8 = arith.constant dense<0.000000e+00> : vector<8x128xf32>
    %11 = tpu.matmul %9, %10, %cst_8 {dimension_numbers = #tpu.dot_dimension_numbers<[1], [0], [0], [1], [0, 0, 1, 1], [], []>} : vector<8x128xbf16>, vector<128x128xbf16>, vector<8x128xf32> -> vector<8x128xf32>
    %c0_9 = arith.constant 0 : index
    %c0_10 = arith.constant 0 : index
    %12 = vector.load %arg5[%c0_9, %c0_10] : memref<1x128xf32, #tpu.memory_space<vmem>>, vector<1x128xf32>
    %13 = vector.broadcast %12 : vector<1x128xf32> to vector<8x128xf32>
    %14 = arith.addf %11, %13 : vector<8x128xf32>
    %cst_11 = arith.constant 0.000000e+00 : f32
    %15 = vector.broadcast %cst_11 : f32 to vector<8x128xf32>
    %16 = arith.maximumf %14, %15 : vector<8x128xf32>
    %17 = arith.truncf %16 : vector<8x128xf32> to vector<8x128xbf16>
    %c0_12 = arith.constant 0 : index
    %c0_13 = arith.constant 0 : index
    %18 = vector.load %arg6[%c0_12, %c0_13] : memref<128x8xbf16, #tpu.memory_space<vmem>>, vector<128x8xbf16>
    %cst_14 = arith.constant dense<0.000000e+00> : vector<8x8xf32>
    %19 = tpu.matmul %17, %18, %cst_14 {dimension_numbers = #tpu.dot_dimension_numbers<[1], [0], [0], [1], [0, 0, 1, 1], [], []>} : vector<8x128xbf16>, vector<128x8xbf16>, vector<8x8xf32> -> vector<8x8xf32>
    %c0_15 = arith.constant 0 : index
    %c0_16 = arith.constant 0 : index
    %20 = vector.load %arg7[%c0_15, %c0_16] : memref<1x8xf32, #tpu.memory_space<vmem>>, vector<1x8xf32>
    %21 = vector.broadcast %20 : vector<1x8xf32> to vector<8x8xf32>
    %22 = arith.addf %19, %21 : vector<8x8xf32>
    %23 = arith.negf %22 : vector<8x8xf32>
    %24 = math.exp %23 : vector<8x8xf32>
    %cst_17 = arith.constant 1.000000e+00 : f32
    %25 = vector.broadcast %cst_17 : f32 to vector<8x8xf32>
    %26 = arith.addf %25, %24 : vector<8x8xf32>
    %27 = arith.divf %25, %26 : vector<8x8xf32>
    %c0_18 = arith.constant 0 : index
    %c0_19 = arith.constant 0 : index
    %28 = vector.load %arg8[%c0_18, %c0_19] : memref<8x8xf32, #tpu.memory_space<vmem>>, vector<8x8xf32>
    tpu.vector_store %arg8[%c0_18, %c0_19], %27 {strides = array<i32>} : memref<8x8xf32, #tpu.memory_space<vmem>>, vector<8x8xf32>,
    return
  }
  func.func @transform_0(%arg0: i32) -> (i32, i32) {
    %c0_i32 = arith.constant 0 : i32
    %c0_i32_0 = arith.constant 0 : i32
    return %arg0, %c0_i32 : i32, i32
  }
  func.func @transform_1(%arg0: i32) -> (i32, i32) {
    %c0_i32 = arith.constant 0 : i32
    %c0_i32_0 = arith.constant 0 : i32
    %c0_i32_1 = arith.constant 0 : i32
    return %c0_i32, %c0_i32_0 : i32, i32
  }
  func.func @transform_2(%arg0: i32) -> (i32, i32) {
    %c0_i32 = arith.constant 0 : i32
    %c0_i32_0 = arith.constant 0 : i32
    %c0_i32_1 = arith.constant 0 : i32
    return %c0_i32, %c0_i32_0 : i32, i32
  }
  func.func @transform_3(%arg0: i32) -> (i32, i32) {
    %c0_i32 = arith.constant 0 : i32
    %c0_i32_0 = arith.constant 0 : i32
    %c0_i32_1 = arith.constant 0 : i32
    return %c0_i32, %c0_i32_0 : i32, i32
  }
  func.func @transform_4(%arg0: i32) -> (i32, i32) {
    %c0_i32 = arith.constant 0 : i32
    %c0_i32_0 = arith.constant 0 : i32
    %c0_i32_1 = arith.constant 0 : i32
    return %c0_i32, %c0_i32_0 : i32, i32
  }
  func.func @transform_5(%arg0: i32) -> (i32, i32) {
    %c0_i32 = arith.constant 0 : i32
    %c0_i32_0 = arith.constant 0 : i32
    %c0_i32_1 = arith.constant 0 : i32
    return %c0_i32, %c0_i32_0 : i32, i32
  }
  func.func @transform_6(%arg0: i32) -> (i32, i32) {
    %c0_i32 = arith.constant 0 : i32
    %c0_i32_0 = arith.constant 0 : i32
    %c0_i32_1 = arith.constant 0 : i32
    return %c0_i32, %c0_i32_0 : i32, i32
  }
  func.func @transform_7(%arg0: i32) -> (i32, i32) {
    %c0_i32 = arith.constant 0 : i32
    %c0_i32_0 = arith.constant 0 : i32
    return %arg0, %c0_i32 : i32, i32
  }
}

</mosaic_0001>

<bundles_post_ra>
// kernel: tpu_custom_call.1
= control target key start
LH: loop header
LB: loop body
LE: loop exit
PB: predicated region body
PF: predicated region fallthrough
CT: control target
= control target key end

     0   :  { %12 = vsyncpa [#allocation3], 0  ;;  %s682_s0 = inlined_call_operand.vmem [shape: f32[8,32], index: 0, kind: input, shape index: {}]   ;;  %s683_s1 = inlined_call_operand.hbm [shape: bf16[32,128], index: 1, kind: input, shape index: {}]   ;;  %s684_s2 = inlined_call_operand.vmem [shape: f32[1,128], index: 2, kind: input, shape index: {}]   ;;  %s685_s3 = inlined_call_operand.vmem [shape: bf16[128,128], index: 3, kind: input, shape index: {}]   ;;  %s686_s4 = inlined_call_operand.vmem [shape: f32[1,128], index: 4, kind: input, shape index: {}]   ;;  %s687_s5 = inlined_call_operand.vmem [shape: bf16[128,8], index: 5, kind: input, shape index: {}]   ;;  %s688_s6 = inlined_call_operand.vmem [shape: f32[1,8], index: 6, kind: input, shape index: {}]   ;;  %s689_s7 = inlined_call_operand.hbm [shape: f32[8,8], index: 7, kind: output, shape index: {}]  }
   0x1   :  { %13 = vsyncpa [#allocation4], 0  ;;  %s528_s24 = smov [#allocation2]   ;;  %s480_s28 = scalar_lea.hbm %s683_s1, 256 }
   0x2   :  { %s21_s25 = sshll.u32 %s528_s24, 4  ;;  %p481_p0 = scmp.ne.s32.totalorder %s683_s1, %s480_s28  ;;  %s22_s25 = int_to_ptr.vmem [resolvable:$true] %s21_s25 }
   0x3   :  { %p484_p1 = scmp.lt.u32.totalorder %s480_s28, %s683_s1 }
   0x5   :  { %p486_p2 = pnand %p484_p1, %p481_p0 }
   0x7   :  { %489 = shalt.err (!%p486_p2)
}
   0x8   :  { %s490_s10 = scalar_lea.vmem %s22_s25, 256  ;;  %p495_p4 = scmp.lt.s32.totalorder %s22_s25, %s22_s25 }
   0x9   :  { %p491_p3 = scmp.ne.s32.totalorder %s22_s25, %s490_s10  ;;  %p496_p5 = scmp.lt.s32.totalorder %s490_s10, %s490_s10 }
   0xb   :  { %p497_p6 = por %p496_p5, %p495_p4 }
   0xd   :  { %p498_p7 = pnand %p497_p6, %p491_p3 }
   0xf   :  { %501 = shalt.err (!%p498_p7)
}
  0x10   :  { %s529_s11 = smov 64   ;;  %s530_s12 = smov 4  }
  0x11   :  { %27 = dma.hbm_to_vmem [thread:$0]  %s683_s1, 256, %s22_s25, [#allocation3], %s529_s11, %s529_s11, %s530_s12  }
  0x12   :  { %524 = dma.done.wait [#allocation3], 256  }
  0x13   :  { %525 = vsyncadd [#allocation3], 4294967040  ;;  %v531_v0 = vmov 0.0   ;;  %vm532_vm0 = vmmov 0   ;;  %v458_v1 = vld [vmem:[#allocation2] sm:$0xff]   ;;  %v459_v2 = vld [vmem:[#allocation2 + $0x8] sm:$0xff]  }
  0x14   :  { %404 = vmatprep.subr.bf16.mxu0 %v531_v0  ;;  %408 = vmatprep.mubr.msk.bf16.mxu0 %vm532_vm0, %v531_v0  ;;  %v42_v3 = vld [vmem:[%s682_s0] sm:$0xff]  ;;  %v461_v6 = vld [vmem:[%s685_s3 + $0x8] sm:$0xff]   ;;  %vm67_vm1 = vcmask 261120   ;;  %v462_v7 = vld [vmem:[%s685_s3 + $0x10] sm:$0xff]   ;;  %vm343_vm2 = vcmask 64512  }
  0x15   :  { %412 = vmatprep.subr.bf16.mxu1 %v531_v0  ;;  %428 = vmatprep.mubr.msk.bf16.mxu1 %vm532_vm0, %v531_v0  ;;  %v460_v4 = vld [vmem:[%s685_s3] sm:$0xff]   ;;  %v43_v5 = vpack.c.bf16 %v42_v3, %v42_v3  ;;  %v463_v8 = vld [vmem:[%s685_s3 + $0x18] sm:$0xff]   ;;  %v465_v10 = vld [vmem:[%s685_s3 + $0x28] sm:$0xff]  }
  0x16   :  { %405 = vmatpush3.bf16.msra.mxu0 %v458_v1  ;;  %413 = vmatpush3.bf16.msra.mxu1 %v460_v4  ;;  %v464_v9 = vld [vmem:[%s685_s3 + $0x20] sm:$0xff]   ;;  %v466_v11 = vld [vmem:[%s685_s3 + $0x30] sm:$0xff]   ;;  %v467_v12 = vld [vmem:[%s685_s3 + $0x38] sm:$0xff]  }
  0x17   :  { %406 = vmatprep.subr.bf16.mxu0 %v531_v0  ;;  %414 = vmatprep.subr.bf16.mxu1 %v531_v0  ;;  %v468_v13 = vld [vmem:[%s687_s5] sm:$0xff]   ;;  %v469_v14 = vld [vmem:[%s687_s5 + $0x8] sm:$0xff]   ;;  %v470_v15 = vld [vmem:[%s687_s5 + $0x10] sm:$0xff]  }
  0x18   :  { %v471_v16 = vld [vmem:[%s687_s5 + $0x18] sm:$0xff]   ;;  %v472_v17 = vld [vmem:[%s687_s5 + $0x20] sm:$0xff]   ;;  %v473_v18 = vld [vmem:[%s687_s5 + $0x28] sm:$0xff]  }
  0x19   :  { %v360_v19 = vld [vmem:[%s684_s2] ss:$0 sm:$0xff]  ;;  %v474_v27 = vld [vmem:[%s687_s5 + $0x30] sm:$0xff]   ;;  %v475_v28 = vld [vmem:[%s687_s5 + $0x38] sm:$0xff]  }
  0x1a   :  { %407 = vmatpush3.bf16.msra.mxu0 %v459_v2  ;;  %415 = vmatpush3.bf16.msra.mxu1 %v461_v6  ;;  %v364_v29 = vld [vmem:[%s686_s4] ss:$0 sm:$0xff]  ;;  %s533_s4 = smov [#allocation5]  }
  0x1b   :  { %432 = vmatprep.subr.bf16.mxu0 %v531_v0  ;;  %416 = vmatprep.subr.bf16.mxu1 %v531_v0  ;;  %v373_v37 = vld [vmem:[%s688_s6] ss:$0 sm:$0xff]  ;;  %s351_s5 = sshll.u32 %s533_s4, 4  ;;  %s352_s5 = int_to_ptr.vmem [resolvable:$true] %s351_s5 }
  0x1c   :  { %s502_s26 = scalar_lea.vmem %s352_s5, 128  ;;  %p507_p9 = scmp.lt.s32.totalorder %s352_s5, %s352_s5 }
  0x1d   :  { %409 = vmatmul.mubr.msk.bf16.vlgmr.msra.gmra.mrb[0].mxu0 %vm67_vm1, %v43_v5  ;;  %p503_p8 = scmp.ne.s32.totalorder %s352_s5, %s502_s26  ;;  %p508_p10 = scmp.lt.s32.totalorder %s502_s26, %s502_s26 }
  0x1e   :  { %448 = vmatprep.mubr.msk.bf16.mxu0 %vm532_vm0, %v531_v0  ;;  %417 = vmatpush3.bf16.msra.mxu1 %v462_v7 }
  0x1f   :  { %418 = vmatprep.subr.bf16.mxu1 %v531_v0  ;;  %433 = vmatpush3.bf16.msra.mxu0 %v468_v13  ;;  %p509_p11 = por %p508_p10, %p507_p9 }
  0x20   :  { %434 = vmatprep.subr.bf16.mxu0 %v531_v0 }
  0x21   :  { %p510_p12 = pnand %p509_p11, %p503_p8 }
  0x22   :  { %419 = vmatpush3.bf16.msra.mxu1 %v463_v8 }
  0x23   :  { %420 = vmatprep.subr.bf16.mxu1 %v531_v0  ;;  %435 = vmatpush3.bf16.msra.mxu0 %v469_v14 }
  0x24   :  { %436 = vmatprep.subr.bf16.mxu0 %v531_v0 }
  0x26   :  { %421 = vmatpush3.bf16.msra.mxu1 %v464_v9 }
  0x27   :  { %422 = vmatprep.subr.bf16.mxu1 %v531_v0  ;;  %437 = vmatpush3.bf16.msra.mxu0 %v470_v15 }
  0x28   :  { %438 = vmatprep.subr.bf16.mxu0 %v531_v0 }
  0x2a   :  { %423 = vmatpush3.bf16.msra.mxu1 %v465_v10 }
  0x2b   :  { %424 = vmatprep.subr.bf16.mxu1 %v531_v0  ;;  %439 = vmatpush3.bf16.msra.mxu0 %v471_v16 }
  0x2c   :  { %440 = vmatprep.subr.bf16.mxu0 %v531_v0 }
  0x2e   :  { %425 = vmatpush3.bf16.msra.mxu1 %v466_v11 }
  0x2f   :  { %426 = vmatprep.subr.bf16.mxu1 %v531_v0  ;;  %441 = vmatpush3.bf16.msra.mxu0 %v472_v17 }
  0x30   :  { %442 = vmatprep.subr.bf16.mxu0 %v531_v0 }
  0x32   :  { %427 = vmatpush3.bf16.msra.mxu1 %v467_v12 }
  0x33   :  { %443 = vmatpush3.bf16.msra.mxu0 %v473_v18 }
  0x34   :  { %444 = vmatprep.subr.bf16.mxu0 %v531_v0 }
  0x37   :  { %445 = vmatpush3.bf16.msra.mxu0 %v474_v27 }
  0x38   :  { %446 = vmatprep.subr.bf16.mxu0 %v531_v0 }
  0x3b   :  { %447 = vmatpush3.bf16.msra.mxu0 %v475_v28 }
  0xf0   :  { %v105_v20 = vpop.f32.mrb[0].mxu0 }
  0xf1   :  { %v106_v21 = vadd.f32 %v360_v19, %v105_v20  ;;  %v410_v22 = vpop.f32.mrb[1].mxu0 }
  0xf2   :  { %v108_v23 = vpop.f32.mrb[2].mxu0 }
  0xf3   :  { %v111_v24 = vmax.f32 %v106_v21, 0.0  ;;  %v411_v25 = vpop.f32.mrb[3].mxu0 }
  0xf5   :  { %v112_v26 = vpack.c.bf16 %v111_v24, %v111_v24 }
  0xf7   :  { %429 = vmatmul.mubr.bf16.vlgmr.msra.gmra.mrb[0].mxu1 %v112_v26 }
 0x1ca   :  { %v218_v30 = vpop.f32.mrb[0].mxu1 }
 0x1cb   :  { %v219_v31 = vadd.f32 %v364_v29, %v218_v30  ;;  %v430_v32 = vpop.f32.mrb[1].mxu1 }
 0x1cc   :  { %v221_v33 = vpop.f32.mrb[2].mxu1 }
 0x1cd   :  { %v224_v34 = vmax.f32 %v219_v31, 0.0  ;;  %v431_v35 = vpop.f32.mrb[3].mxu1 }
 0x1cf   :  { %v225_v36 = vpack.c.bf16 %v224_v34, %v224_v34 }
 0x1d1   :  { %449 = vmatmul.mubr.bf16.vlgmr.msra.gmra.mrb[4].mxu0 %v225_v36 }
 0x2a4   :  { %v331_v38 = vpop.f32.mrb[4].mxu0 }
 0x2a5   :  { %v332_v39 = vadd.f32 %v373_v37, %v331_v38  ;;  %v450_v40 = vpop.f32.mrb[5].mxu0 }
 0x2a6   :  { %v334_v41 = vpop.f32.mrb[6].mxu0 }
 0x2a7   :  { %v382_v42 = vmul.f32 -1.442695, %v332_v39  ;;  %v451_v43 = vpop.f32.mrb[7].mxu0 }
 0x2a9   :  { %476 = vpow2.f32 %v382_v42 }
 0x2b3   :  { %v477_v44 = vpop.eup %476 }
 0x2b4   :  { %v340_v45 = vadd.f32 1.0, %v477_v44 }
 0x2b6   :  { %478 = vrcp.f32 %v340_v45 }
 0x2c0   :  { %v479_v46 = vpop.eup %478 }
 0x2c1   :  { %344 = vst.msk [vmem:[#allocation5] sm:$0xff] %vm343_vm2, %v479_v46 }
 0x2c2   :  { %513 = shalt.err (!%p510_p12)
}
 0x2c3   :  { %s514_s28 = scalar_lea.hbm %s689_s7, 128 }
 0x2c4   :  { %p515_p13 = scmp.ne.s32.totalorder %s689_s7, %s514_s28  ;;  %p518_p0 = scmp.lt.u32.totalorder %s514_s28, %s689_s7 }
 0x2c6   :  { %p520_p1 = pnand %p518_p0, %p515_p13 }
 0x2c8   :  { %523 = shalt.err (!%p520_p1)
}
 0x2c9   :  { %354 = dma.vmem_to_hbm [thread:$0]  %s352_s5, 128, %s689_s7, [#allocation4]  }
 0x2ca   :  { %526 = dma.done.wait [#allocation4], 128  }
 0x2cb   :  { %527 = vsyncadd [#allocation4], 4294967168 }
 0x2cc   :  { %358 = vsyncpa [#allocation3], 1 }
 0x2cd   :  { %359 = vsyncpa [#allocation4], 1 }

</bundles_post_ra>
